<compile_context>
chip_gen: v7x
topology: tpu7x:2x2x1
jax: 0.10.0
libtpu: 0.0.40
codegen_flags: <defaults>
</compile_context>

<pallas_src>
import jax
import jax.numpy as jnp
from jax.experimental import pallas as pl
from jax.experimental.pallas import tpu as pltpu


def _sse_kernel(w_ref, b_ref, x_ref, o_ref):
    # w_ref: (1, C)     VMEM f32 -- 1x1-conv weight with BN scale folded in
    # b_ref: (1,)       SMEM f32 -- folded BN bias
    # x_ref: (1, C, TS) VMEM     -- one batch element, lane-dense spatial tile
    # o_ref: (1, 1, TS) VMEM     -- output tile
    x = x_ref[0]                              # (C, TS)
    if x.dtype != jnp.float32:
        x = x.astype(jnp.float32)             # VPU cast, hidden under the DMA
    z = jnp.dot(
        w_ref[...],                           # (1, C)
        x,                                    # (C, TS)
        preferred_element_type=jnp.float32,
        precision=jax.lax.Precision.HIGHEST,
    )                                         # (1, TS) channel reduction on MXU
    o_ref[0] = jax.nn.sigmoid(z + b_ref[0]).astype(o_ref.dtype)


def _round_up(a, b):
    return (a + b - 1) // b * b


def _pick_spatial_tile(HW, C, N, itemsize, budget_bytes):
    """Pick TS (multiple of 128) that divides round_up(HW, 128), keeps the
    x block within `budget_bytes`, and yields >= 2 total grid steps when
    possible (v7x has 2 TensorCores)."""
    hw128 = _round_up(HW, 128)
    units = hw128 // 128
    budget_units = max(1, budget_bytes // (C * itemsize * 128))

    # largest divisor of `units` within the byte budget
    ts_units = 1
    for d in range(min(units, budget_units), 0, -1):
        if units % d == 0:
            ts_units = d
            break

    # ensure >= 2 grid steps overall so both v7x TensorCores get work
    if N * (units // ts_units) < 2 and units > 1:
        for d in range(units // 2, 0, -1):
            if units % d == 0:
                ts_units = d
                break

    return ts_units * 128, hw128


def sse_forward(x, conv_w, bn_gamma, bn_beta, bn_mean, bn_var, eps=1e-5,
                stream_dtype=None):
    """x: (N, C, H, W). conv_w: (1, C, 1, 1). Returns sigmoid(BN(conv1x1(x))),
    shape (N, 1, H, W).  Pass stream_dtype=jnp.bfloat16 to halve x's HBM
    traffic (accumulation stays f32)."""
    N, C, H, W = x.shape
    HW = H * W
    out_dtype = x.dtype

    # --- glue: fold eval-mode BatchNorm2d(1) into the bias-free 1x1 conv ---
    inv_std = 1.0 / jnp.sqrt(bn_var + eps)                                # (1,)
    scale = bn_gamma * inv_std                                            # (1,)
    w_eff = (conv_w[0, :, 0, 0] * scale).reshape(1, C).astype(jnp.float32)
    b_eff = (bn_beta - bn_gamma * bn_mean * inv_std).astype(jnp.float32)  # (1,)

    # --- lane-dense flattened spatial layout (NCHW row-major -> free reshape) ---
    x_flat = x.reshape(N, C, HW)
    if stream_dtype is not None and x_flat.dtype != stream_dtype:
        x_flat = x_flat.astype(stream_dtype)
    itemsize = jnp.dtype(x_flat.dtype).itemsize

    # ~8 MiB x block (double-buffered -> <=16 MiB; fits v7x's 64 MiB physical
    # VMEM with headroom; vmem_limit_bytes is raised above v5e's 16 MiB scoped
    # default to match).
    ts, hw_pad = _pick_spatial_tile(HW, C, N, itemsize, budget_bytes=8 << 20)
    n_tiles = hw_pad // ts

    # pad only to a 128-lane multiple; TS divides hw_pad so no further padding
    # is ever needed (no-op for common shapes -> no whole-tensor re-stream).
    if hw_pad != HW:
        x_flat = jnp.pad(x_flat, ((0, 0), (0, 0), (0, hw_pad - HW)))

    out_flat = pl.pallas_call(
        _sse_kernel,
        out_shape=jax.ShapeDtypeStruct((N, 1, hw_pad), out_dtype),
        grid_spec=pltpu.PrefetchScalarGridSpec(
            num_scalar_prefetch=0,
            grid=(N, n_tiles),
            in_specs=[
                pl.BlockSpec((1, C), lambda n, t: (0, 0)),             # weight (reused)
                pl.BlockSpec(memory_space=pltpu.MemorySpace.SMEM),     # scalar bias
                pl.BlockSpec((1, C, ts), lambda n, t: (n, 0, t)),      # x tile
            ],
            out_specs=pl.BlockSpec((1, 1, ts), lambda n, t: (n, 0, t)),
        ),
        compiler_params=pltpu.CompilerParams(
            dimension_semantics=("parallel", "parallel"),
            vmem_limit_bytes=32 * 1024 * 1024,
        ),
    )(w_eff, b_eff, x_flat)

    # padded lanes hold sigmoid(bias); always slice back to the true extent.
    return out_flat[:, :, :HW].reshape(N, 1, H, W)


if __name__ == "__main__":
    N, C, H, W = 2, 4, 16, 16

    key = jax.random.PRNGKey(0)
    k_x, k_w, k_g, k_b, k_m, k_v = jax.random.split(key, 6)

    x = jax.random.normal(k_x, (N, C, H, W), dtype=jnp.float32)

    # Conv2d(C, 1, kernel_size=1, bias=False) weight: (1, C, 1, 1)
    conv_w = jax.random.normal(k_w, (1, C, 1, 1), dtype=jnp.float32) * 0.5
    # BatchNorm2d(1) parameters / running stats (deterministic, non-trivial)
    bn_gamma = 1.0 + 0.1 * jax.random.normal(k_g, (1,), dtype=jnp.float32)
    bn_beta = 0.1 * jax.random.normal(k_b, (1,), dtype=jnp.float32)
    bn_mean = 0.1 * jax.random.normal(k_m, (1,), dtype=jnp.float32)
    bn_var = 1.0 + 0.1 * jnp.abs(jax.random.normal(k_v, (1,), dtype=jnp.float32))

    out = sse_forward(x, conv_w, bn_gamma, bn_beta, bn_mean, bn_var)
    out = jax.block_until_ready(out)

    # pure-JAX reference (elementwise channel reduction -> no matmul-precision games)
    eps = 1e-5
    conv = jnp.sum(x * conv_w[0, :, 0, 0][None, :, None, None], axis=1, keepdims=True)
    bn = bn_gamma * (conv - bn_mean) / jnp.sqrt(bn_var + eps) + bn_beta
    ref = jax.nn.sigmoid(bn)

    assert out.shape == (N, 1, H, W)
    assert jnp.allclose(out, ref, atol=1e-5, rtol=1e-5), "mismatch vs reference"

    print("KERNEL_OK")
</pallas_src>

<mosaic_0001>
module attributes {stable_mosaic.version = 11 : i64} {
  func.func @_sse_kernel(%arg0: i32, %arg1: i32, %arg2: memref<1x4xf32, #tpu.memory_space<vmem>>, %arg3: memref<1xf32, #tpu.memory_space<smem>>, %arg4: memref<1x4x256xf32, #tpu.memory_space<vmem>>, %arg5: memref<1x1x256xf32, #tpu.memory_space<vmem>>) attributes {dimension_semantics = [#tpu.dimension_semantics<parallel>, #tpu.dimension_semantics<parallel>], iteration_bounds = array<i64: 2, 1>, scalar_prefetch = 0 : i64, scratch_operands = 0 : i64, tpu.core_type = #tpu.core_type<tc>, window_params = [{pipeline_mode = #tpu.pipeline_mode<synchronous>, transform_indices = @transform_0, window_bounds = array<i64: 1, 4>}, {transform_indices = @transform_1, window_bounds = array<i64: 1>}, {transform_indices = @transform_2, window_bounds = array<i64: 1, 4, 256>}, {transform_indices = @transform_3, window_bounds = array<i64: 1, 1, 256>}]} {
    %c0 = arith.constant 0 : index
    %c0_0 = arith.constant 0 : index
    %c0_1 = arith.constant 0 : index
    %0 = vector.load %arg4[%c0, %c0_0, %c0_1] : memref<1x4x256xf32, #tpu.memory_space<vmem>>, vector<1x4x256xf32>
    %1 = vector.shape_cast %0 : vector<1x4x256xf32> to vector<4x256xf32>
    %c0_2 = arith.constant 0 : index
    %c0_3 = arith.constant 0 : index
    %2 = vector.load %arg2[%c0_2, %c0_3] : memref<1x4xf32, #tpu.memory_space<vmem>>, vector<1x4xf32>
    %cst = arith.constant dense<0.000000e+00> : vector<1x256xf32>
    %3 = tpu.matmul %2, %1, %cst {dimension_numbers = #tpu.dot_dimension_numbers<[1], [0], [0], [1], [0, 0, 1, 1], [], []>, precision = #tpu.contract_precision<fp32>} : vector<1x4xf32>, vector<4x256xf32>, vector<1x256xf32> -> vector<1x256xf32>
    %c0_4 = arith.constant 0 : index
    %4 = memref.load %arg3[%c0_4] : memref<1xf32, #tpu.memory_space<smem>>
    %5 = vector.broadcast %4 : f32 to vector<1x256xf32>
    %6 = arith.addf %3, %5 : vector<1x256xf32>
    %7 = arith.negf %6 : vector<1x256xf32>
    %8 = math.exp %7 : vector<1x256xf32>
    %cst_5 = arith.constant 1.000000e+00 : f32
    %9 = vector.broadcast %cst_5 : f32 to vector<1x256xf32>
    %10 = arith.addf %9, %8 : vector<1x256xf32>
    %11 = arith.divf %9, %10 : vector<1x256xf32>
    %c0_6 = arith.constant 0 : index
    %c0_7 = arith.constant 0 : index
    %c0_8 = arith.constant 0 : index
    %12 = vector.load %arg5[%c0_6, %c0_7, %c0_8] : memref<1x1x256xf32, #tpu.memory_space<vmem>>, vector<1x1x256xf32>
    %13 = vector.shape_cast %12 : vector<1x1x256xf32> to vector<1x256xf32>
    %14 = vector.shape_cast %11 : vector<1x256xf32> to vector<1x1x256xf32>
    tpu.vector_store %arg5[%c0_6, %c0_7, %c0_8], %14 {strides = array<i32>} : memref<1x1x256xf32, #tpu.memory_space<vmem>>, vector<1x1x256xf32>,
    return
  }
  func.func @transform_0(%arg0: i32, %arg1: i32) -> (i32, i32) {
    %c0_i32 = arith.constant 0 : i32
    %c0_i32_0 = arith.constant 0 : i32
    %c0_i32_1 = arith.constant 0 : i32
    return %c0_i32, %c0_i32_0 : i32, i32
  }
  func.func @transform_1(%arg0: i32, %arg1: i32) -> i32 {
    %c0_i32 = arith.constant 0 : i32
    %c0_i32_0 = arith.constant 0 : i32
    return %c0_i32 : i32
  }
  func.func @transform_2(%arg0: i32, %arg1: i32) -> (i32, i32, i32) {
    %c0_i32 = arith.constant 0 : i32
    %c0_i32_0 = arith.constant 0 : i32
    return %arg0, %c0_i32, %arg1 : i32, i32, i32
  }
  func.func @transform_3(%arg0: i32, %arg1: i32) -> (i32, i32, i32) {
    %c0_i32 = arith.constant 0 : i32
    %c0_i32_0 = arith.constant 0 : i32
    return %arg0, %c0_i32, %arg1 : i32, i32, i32
  }
}

</mosaic_0001>

<bundles_post_ra>
// kernel: tpu_custom_call.1
= control target key start
LH: loop header
LB: loop body
LE: loop exit
PB: predicated region body
PF: predicated region fallthrough
CT: control target
= control target key end

     0   :  { %s1245_s0 = inlined_call_operand.vmem [shape: f32[1,4], index: 0, kind: input, shape index: {}]   ;;  %s1246_s1 = inlined_call_operand.<no memory space> [shape: f32[1], index: 1, kind: input, shape index: {}]   ;;  %s1247_s2 = inlined_call_operand.hbm [shape: f32[2,4,256], index: 2, kind: input, shape index: {}]   ;;  %s1248_s3 = inlined_call_operand.hbm [shape: f32[2,1,256], index: 3, kind: output, shape index: {}]  }
   0x1   :  { %8 = sst [smem:[#allocation2]] %s1246_s1 }
   0x2   :  { %9 = vsyncpa [#allocation4], 0 }
   0x3   :  { %11 = vsyncpa [#allocation4 + $0x1], 0 }
   0x4   :  { %12 = vsyncpa [#allocation5], 0 }
   0x5   :  { %14 = vsyncpa [#allocation5 + $0x1], 0  ;;  %s1069_s14 = smov 0   ;;  %s1071_s15 = smov 0  }
   0x6   :  { %s1073_s16 = smov 0   ;;  %s1075_s17 = smov 0  }
   0x7   :  { %s1077_s18 = smov 0   ;;  %s1079_s19 = smov 0  }
   0x8 LB: > { %s824_s1 = sadd.s32 4294967295, %s1040_s19   ;;  %s825_s20 = sadd.s32 4294967294, %s1040_s19   ;;  %s1040_s19 = sphi %s1079_s19, %s20_s19   ;;  %s1036_s18 = sphi %s1077_s18, %s1264_s18   ;;  %s1032_s17 = sphi %s1075_s17, %s1263_s17   ;;  %s1028_s16 = sphi %s1073_s16, %s1262_s16   ;;  %s1024_s15 = sphi %s1071_s15, %s1261_s15   ;;  %s1020_s14 = sphi %s1069_s14, %s1260_s14  }
   0x9   : > { %s32_s21 = sadd.s32 1, %s1036_s18  ;;  %s83_s22 = sadd.s32 1, %s1028_s16 }
   0xa   : > { %p34_p0 = scmp.ge.s32.totalorder %s32_s21, 2  ;;  %p90_p1 = scmp.ne.s32.totalorder %s1028_s16, %s1024_s15 }
   0xb   : > { %p91_p2 = scmp.eq.s32.totalorder %s1040_s19, 0  ;;  %p96_p3 = scmp.ne.s32.totalorder %s1024_s15, %s1020_s14 }
   0xc   : > { %s1266_s21 = smov (%p34_p0, %s32_s21), 0  ;;  %p97_p5 = scmp.eq.s32.totalorder %s824_s1, 0 }
   0xd   : > { %p1110_p4 = por %p91_p2, %p90_p1  ;;  %s78_s24 = ssub.s32 %s1036_s18, %s1266_s21 }
   0xe   : > { %p122_p6 = scmp.eq.s32.totalorder %s824_s1, 1  ;;  %p81_p7 = scmp.eq.s32.totalorder %s78_s24, 0 }
   0xf   : > { %p1116_p8 = por %p97_p5, %p96_p3  ;;  %p128_p10 = scmp.eq.s32.totalorder %s825_s20, 1 }
  0x10   : > { %p1120_p9 = por %p122_p6, %p90_p1  ;;  %p867_p13 = scmp.lt.s32.totalorder %s1040_s19, 2 }
  0x11   : > { %s1125_s27 = scalar_select %p81_p7, %s1028_s16, %s83_s22  }
  0x12   : > { %s1252_s26 = scalar_select %p1120_p9, 1, 0 }
  0x13   : > { %p1127_p11 = por %p128_p10, %p96_p3  ;;  %s154_s29 = sand.u32 1, %s1028_s16  }
  0x14   : > { %s828_s30 = sshll.u32 %s154_s29, 3  ;;  %s841_s4 = sshll.u32 %s1036_s18, 7 }
  0x15   : > { %s1253_s28 = scalar_select %p1127_p11, 1, 0 }
  0x16   : > { %s1138_s7 = scalar_lea.hbm %s1247_s2, %s841_s4  ;;  %s158_s8 = scalar_lea.vmem [#allocation3], %s828_s30 }
  0x17   : > { %s168_s9 = sshll.u32 %s158_s8, 4  ;;  %p1144_p0 = pnand %p867_p13, %p1110_p4  ;;  %s1140_s9 = int_to_ptr.vmem [resolvable:$true] %s168_s9 }
  0x18   : > { %s155_s11 = scalar_lea.sflag [#allocation4], %s154_s29  ;;  %s928_s12 = scalar_lea.hbm %s1138_s7, 128 }
  0x19   : > { %p929_p3 = scmp.ne.s32.totalorder %s1138_s7, %s928_s12  ;;  %p930_p5 = pneg %p1144_p0 }
  0x1a   : > { %s933_s20 = scalar_lea.hbm %s1247_s2, 256  ;;  %p934_p4 = scmp.lt.u32.totalorder %s1138_s7, %s1247_s2 }
  0x1b   : > { %p931_p6 = pnand %p930_p5, %p929_p3  ;;  %p935_p10 = scmp.lt.u32.totalorder %s933_s20, %s928_s12 }
  0x1c   : > { %p937_p12 = scmp.lt.u32.totalorder %s928_s12, %s1138_s7 }
  0x1d   : > { %p932_p7 = pneg %p931_p6  ;;  %p936_p13 = por %p935_p10, %p934_p4 }
  0x1f   : > { %p938_p1 = por %p937_p12, %p936_p13 }
  0x21   : > { %p939_p2 = pnand %p938_p1, %p932_p7 }
  0x23   : > { %942 = shalt.err (!%p939_p2)
}
  0x24   : > { %s943_s24 = scalar_lea.vmem %s1140_s9, 128  ;;  %s1042_s29 = smov [#allocation3]  }
  0x25   : > { %p944_p3 = scmp.ne.s32.totalorder %s1140_s9, %s943_s24  ;;  %s948_s30 = sshll.u32 %s1042_s29, 4  ;;  %s949_s30 = int_to_ptr.vmem [resolvable:$false] %s948_s30 }
  0x26   : > { %s950_s4 = scalar_lea.vmem %s949_s30, 256  ;;  %p951_p9 = scmp.lt.s32.totalorder %s1140_s9, %s949_s30 }
  0x27   : > { %p946_p6 = pnand %p944_p3, %p930_p5  ;;  %p952_p4 = scmp.lt.s32.totalorder %s950_s4, %s943_s24 }
  0x29   : > { %p947_p11 = pneg %p946_p6  ;;  %p953_p10 = por %p952_p4, %p951_p9 }
  0x2b   : > { %p954_p12 = pnand %p953_p10, %p947_p11 }
  0x2d   : > { %957 = shalt.err (!%p954_p12)
}
  0x2e   : > { %862 = dma.hbm_to_vmem [thread:$0]  (!%p1144_p0), %s1138_s7, 128, %s1140_s9, %s155_s11  }
  0x2f   : > { %p1255_p1 = scmp.lt.s32.totalorder %s1040_s19, 3  ;;  %p1256_p2 = scmp.ge.s32.totalorder %s1040_s19, 1 }
  0x31   : > { %p174_p5 = pnand %p1256_p2, %p1255_p1 }
  0x32   : > { %s1180_s5 = sand.u32 (!%p174_p5), 1, %s1024_s15  }
  0x33   : > { %177 = sbr.rel (%p174_p5) target bundleno = 351 (0x15f), region = 32  ;;  %s832_s6 = sshll.u32 (!%p174_p5), %s1180_s5, 3 }
  0x34   : > { %s180_s8 = scalar_lea.sflag (!%p174_p5), [#allocation4], %s1180_s5  ;;  %s183_s12 = scalar_lea.vmem (!%p174_p5), [#allocation3], %s832_s6 }
  0x3a   : > { %1011 = dma.done.wait (%p1116_p8), %s180_s8, 128  }
  0x3b   : > { %1013 = vsyncadd (%p1116_p8), %s180_s8, 4294967168  ;;  %v1043_v0 = vmov 0.0   ;;  %vm218_vm0 = vcmask 1043456   ;;  %vm214_vm1 = vcmask 31744   ;;  %v208_v1 = vld [vmem:[%s183_s12] sm:$0xff]  ;;  %s210_s25 = sld [smem:[#allocation2]]  ;;  %v706_v39 = vlaneseq }
  0x3c   : > { %526 = vmatprep.mubr.f32.mxu0 %v1043_v0  ;;  %289 = vmatprep.mubr.f32.mxu1 %v1043_v0  ;;  %v209_v2 = vld [vmem:[%s1245_s0] sm:$0x1]  ;;  %v213_v3 = vcombine.high %v208_v1, %v208_v1  ;;  %v219_v4 = vsel %vm218_vm0, %v208_v1, 0  ;;  %v1044_v37 = vmov 1966171168   ;;  %s833_s10 = sshll.u32 %s1180_s5, 1 }
  0x3d   : > { %v216_v5 = vsel %vm214_vm1, %v209_v2, 0  ;;  %v225_v6 = vand.u32 4294901760, %v219_v4  ;;  %v704_v38 = vunpack.c.l.s4 %v1044_v37  ;;  %v707_v41 = vshrl.u32 %v706_v39, 7  ;;  %s842_s11 = sshll.u32 %s1032_s17, 5  ;;  %s205_s13 = scalar_lea.vmem [#allocation6], %s833_s10 }
  0x3e   : > { %v290_v7 = vand.u32 4294901760, %v216_v5  ;;  %v221_v8 = vsel %vm218_vm0, %v213_v3, 0  ;;  %s740_s1 = sshll.u32 %s205_s13, 4  ;;  %vm720_vm2 = vcmp.lt.s32.totalorder %v706_v39, 256  ;;  %s1196_s23 = scalar_lea.hbm %s1248_s3, %s842_s11  ;;  %s1198_s1 = int_to_ptr.vmem [resolvable:$true] %s740_s1 }
  0x3f   : > { %v223_v9 = vand.u32 4294901760, %v221_v8  ;;  %v308_v10 = vsub.f32 %v219_v4, %v225_v6  ;;  %v705_v40 = vunpack.c.0.s8 %v704_v38  ;;  %s724_s24 = scalar_lea.sflag [#allocation5], %s1180_s5  ;;  %s958_s29 = scalar_lea.vmem %s1198_s1, 32 }
  0x40   : > { %v291_v11 = vsub.f32 %v216_v5, %v290_v7  ;;  %p959_p8 = scmp.ne.s32.totalorder %s1198_s1, %s958_s29  ;;  %p1257_p9 = scmp.ne.s32.totalorder %s1252_s26, 0 }
  0x41   : > { %461 = vmatprep.subr.mxu0 %v223_v9  ;;  %224 = vmatprep.subr.mxu1 %v223_v9  ;;  %v302_v13 = vsub.f32 %v221_v8, %v223_v9  ;;  %v309_v14 = vand.u32 4294901760, %v308_v10  ;;  %v211_v24 = vstv %s210_s25  ;;  %v708_v43 = vsub.s32 %v705_v40, %v707_v41  ;;  %s1045_s17 = smov [#allocation6]  }
  0x42   : > { %v292_v12 = vand.u32 4294901760, %v291_v11  ;;  %463 = vmatpush1.msra.mxu0 %v225_v6  ;;  %226 = vmatpush1.msra.mxu1 %v225_v6  ;;  %p960_p11 = pnand %p959_p8, %p1257_p9  ;;  %s962_s30 = sshll.u32 %s1045_s17, 4  ;;  %s963_s30 = int_to_ptr.vmem [resolvable:$false] %s962_s30 }
  0x43   : > { %v303_v16 = vand.u32 4294901760, %v302_v13  ;;  %v310_v17 = vsub.f32 %v308_v10, %v309_v14  ;;  %s964_s4 = scalar_lea.vmem %s963_s30, 64  ;;  %p965_p7 = scmp.lt.s32.totalorder %s1198_s1, %s963_s30 }
  0x44   : > { %530 = vmatmul.mubr.f32.vlgmr.msra.gmra.mrb[0].mxu0 %v292_v12  ;;  %v293_v15 = vsub.f32 %v291_v11, %v292_v12  ;;  %p961_p0 = pneg %p960_p11  ;;  %p966_p13 = scmp.lt.s32.totalorder %s964_s4, %s958_s29 }
  0x45   : > { %606 = vmatprep.mubr.f32.mxu0 %v1043_v0  ;;  %v304_v19 = vsub.f32 %v302_v13, %v303_v16  ;;  %539 = vmatprep.subr.mxu0 %v303_v16  ;;  %v311_v20 = vand.u32 4294901760, %v310_v17 }
  0x46   : > { %v294_v18 = vand.u32 4294901760, %v293_v15  ;;  %543 = vmatpush1.msra.mxu0 %v309_v14  ;;  %p967_p3 = por %p966_p13, %p965_p7 }
  0x47   : > { %v305_v21 = vand.u32 4294901760, %v304_v19  ;;  %615 = vmatprep.subr.mxu0 %v223_v9 }
  0x48   : > { %295 = vmatmul.mubr.f32.vlgmr.msra.gmra.mrb[0].mxu1 %v294_v18  ;;  %p968_p6 = pnand %p967_p3, %p961_p0 }
  0x49   : > { %375 = vmatprep.mubr.f32.mxu1 %v1043_v0  ;;  %306 = vmatprep.subr.mxu1 %v305_v21 }
  0x4a   : > { %312 = vmatpush1.msra.mxu1 %v311_v20 }
  0x4b   : > { %385 = vmatprep.subr.mxu1 %v302_v13 }
  0x4c   : > { %608 = vmatmul.mubr.f32.vlgmr.msra.gmra.mrb[0].mxu0 %v290_v7 }
  0x4d   : > { %617 = vmatpush1.msra.mxu0 %v225_v6  ;;  %680 = vmatprep.mubr.f32.mxu0 %v1043_v0 }
  0x50   : > { %377 = vmatmul.mubr.f32.vlgmr.msra.gmra.mrb[0].mxu1 %v290_v7 }
  0x51   : > { %388 = vmatpush1.msra.mxu1 %v308_v10  ;;  %451 = vmatprep.mubr.f32.mxu1 %v1043_v0 }
  0x54   : > { %682 = vmatmul.mubr.f32.vlgmr.msra.gmra.mrb[0].mxu0 %v290_v7 }
  0x58   : > { %454 = vmatmul.mubr.f32.vlgmr.msra.gmra.mrb[0].mxu1 %v291_v11 }
 0x127   : > { %v683_v22 = vpop.f32.mrb[0].mxu0 }
 0x128   : > { %v685_v23 = vpop.f32.mrb[1].mxu0 }
 0x12b   : > { %v455_v25 = vpop.f32.mrb[0].mxu1 }
 0x12c   : > { %v843_v26 = vadd.f32 %v455_v25, %v211_v24  ;;  %v457_v27 = vpop.f32.mrb[1].mxu1 }
 0x12d   : > { %v845_v28 = vadd.f32 %v457_v27, %v211_v24 }
 0x12e   : > { %v844_v29 = vadd.f32 %v843_v26, %v683_v22 }
 0x12f   : > { %v846_v30 = vadd.f32 %v845_v28, %v685_v23 }
 0x130   : > { %v834_v31 = vmul.f32 -1.442695, %v844_v29 }
 0x131   : > { %v835_v32 = vmul.f32 -1.442695, %v846_v30 }
 0x132   : > { %920 = vpow2.f32 %v834_v31 }
 0x133   : > { %922 = vpow2.f32 %v835_v32 }
 0x13c   : > { %v921_v33 = vpop.eup %920 }
 0x13d   : > { %v923_v34 = vpop.eup %922  ;;  %v694_v35 = vadd.f32 1.0, %v921_v33 }
 0x13e   : > { %v695_v36 = vadd.f32 1.0, %v923_v34 }
 0x13f   : > { %924 = vrcp.f32 %v694_v35 }
 0x140   : > { %926 = vrcp.f32 %v695_v36 }
 0x149   : > { %v925_v42 = vpop.eup %924 }
 0x14a   : > { %v927_v44 = vpop.eup %926 }
 0x14b   : > { %v702_v45 = vcombine.low %v925_v42, %v927_v44 }
 0x14d   : > { %v709_v46 = vrot.slane %v702_v45, %v708_v43 }
 0x14f   : > { %v716_v47 = vrot.slane %v709_v46, %v708_v43 }
 0x151   : > { %722 = vst.msk [vmem:[%s205_s13] sm:$0x3] %vm720_vm2, %v716_v47 }
 0x152   : > { %971 = shalt.err (!%p968_p6)
}
 0x153   : > { %s972_s5 = scalar_lea.hbm %s1196_s23, 32  ;;  %s976_s12 = scalar_lea.hbm %s1248_s3, 64 }
 0x154   : > { %p973_p4 = scmp.ne.s32.totalorder %s1196_s23, %s972_s5  ;;  %p977_p1 = scmp.lt.u32.totalorder %s1196_s23, %s1248_s3 }
 0x155   : > { %p978_p2 = scmp.lt.u32.totalorder %s976_s12, %s972_s5  ;;  %p980_p8 = scmp.lt.u32.totalorder %s972_s5, %s1196_s23 }
 0x156   : > { %p974_p10 = pnand %p973_p4, %p1257_p9 }
 0x157   : > { %p979_p5 = por %p978_p2, %p977_p1 }
 0x158   : > { %p975_p12 = pneg %p974_p10 }
 0x159   : > { %p981_p11 = por %p980_p8, %p979_p5 }
 0x15b   : > { %p982_p0 = pnand %p981_p11, %p975_p12 }
 0x15d   : > { %985 = shalt.err (!%p982_p0)
}
 0x15e   : > { %857 = dma.vmem_to_hbm [thread:$0]  (%p1257_p9), %s1198_s1, 32, %s1196_s23, %s724_s24  }
 0x15f PF: > { %s752_s25 = sand.u32 1, %s1020_s14   ;;  %p1258_p7 = scmp.ne.s32.totalorder %s1253_s28, 0 }
 0x160   : > { %p1259_p13 = scmp.ge.s32.totalorder %s1040_s19, 2  ;;  %s753_s10 = scalar_lea.sflag [#allocation5], %s752_s25 }
 0x162   : > { %p864_p3 = pnand %p1259_p13, %p1258_p7 }
 0x164   : > { %1015 = dma.done.wait (!%p864_p3), %s753_s10, 32  }
 0x165   : > { %1017 = vsyncadd (!%p864_p3), %s753_s10, 4294967264  ;;  %s20_s19 = sadd.s32 1, %s1040_s19   ;;  %s1260_s14 = smov %s1024_s15 }
 0x166   : > { %p17_p6 = scmp.ge.s32.totalorder %s20_s19, 4   ;;  %s1261_s15 = smov %s1028_s16 }
 0x167   : > { %s1262_s16 = smov %s1125_s27  ;;  %s1263_s17 = smov %s1036_s18 }
 0x168   : > { %s1264_s18 = smov %s1266_s21  ;;  %19 = sbr.rel (!%p17_p6) target bundleno = 8 (0x8), region = 77 }
 0x16f   :  { %758 = vsyncpa [#allocation4], 1 }
 0x170   :  { %760 = vsyncpa [#allocation4 + $0x1], 1 }
 0x171   :  { %761 = vsyncpa [#allocation5], 1 }
 0x172   :  { %763 = vsyncpa [#allocation5 + $0x1], 1 }

</bundles_post_ra>
